<compile_context>
chip_gen: v6e
topology: v6e:2x2x1
jax: 0.10.0
libtpu: 0.0.40
codegen_flags: <defaults>
</compile_context>

<pallas_src>
import jax
import jax.numpy as jnp
from jax.experimental import pallas as pl
from jax.experimental.pallas import tpu as pltpu


def _embed_kernel(x_ref, w_ref, pos_ref, o_ref):
    # x_ref:   (1, TN, K)  bf16 patch block for one batch element
    # w_ref:   (K, E)      bf16 flattened conv weight (transposed), grid-invariant
    # pos_ref: (TN, E)     fp32 position embedding + folded conv bias
    # o_ref:   (1, TN, E)  fp32 output block
    acc = jnp.dot(x_ref[0], w_ref[...],
                  preferred_element_type=jnp.float32)      # MXU, fp32 accumulation
    o_ref[0] = (acc + pos_ref[...]).astype(o_ref.dtype)    # fp32 VPU epilogue


def _pick_n_tile(n, max_tile=512):
    """Largest divisor of n that is a multiple of 16 (preferred, bf16 sublane
    packing) or 8, <= max_tile, preferring >= 2 grid steps; falls back to n."""
    for step in (16, 8):
        cands = [t for t in range(step, min(n, max_tile) + 1, step) if n % t == 0]
        if cands:
            multi = [t for t in cands if n // t >= 2]
            return max(multi) if multi else max(cands)
    return n


def siglip_vision_embeddings(pixel_values, conv_weight, conv_bias, pos_embedding,
                             patch_size):
    """pixel_values : [B, C, H, W]   (NCHW, float32)
       conv_weight  : [E, C, P, P]   (PyTorch Conv2d layout)
       conv_bias    : [E]
       pos_embedding: [N, E]
       returns      : [B, N, E]
    """
    B, C, H, W = pixel_values.shape
    E = conv_weight.shape[0]
    P = patch_size
    Hp, Wp = H // P, W // P
    N = Hp * Wp
    K = C * P * P

    # Patch extraction (pure layout) + bf16 cast.  allow_input_fusion below
    # lets XLA fuse this chain into the pallas_call input instead of
    # materializing `patches` in HBM; even unfused, the bf16 cast halves the
    # HBM round-trip for the dominant operand.
    x = pixel_values.reshape(B, C, Hp, P, Wp, P)
    x = jnp.transpose(x, (0, 2, 4, 1, 3, 5))               # [B, Hp, Wp, C, P, P]
    patches = x.reshape(B, N, K).astype(jnp.bfloat16)      # n = hp*Wp + wp ; k = (c,p,q)

    # Conv weight [E, C, P, P] -> [K, E], bf16 for the MXU.
    w_flat = conv_weight.reshape(E, K).T.astype(jnp.bfloat16)
    # Fold the conv bias into the position-embedding table (fp32).
    pos_plus_bias = (pos_embedding + conv_bias[None, :]).astype(jnp.float32)

    TN = _pick_n_tile(N)
    grid = (N // TN, B)   # batch innermost -> weight/pos blocks are not re-DMA'd per b

    out_dtype = pixel_values.dtype
    out_itemsize = jnp.dtype(out_dtype).itemsize
    bytes_accessed = (B * N * K * 2          # patches (bf16)
                      + K * E * 2            # weight (bf16, fetched once)
                      + N * E * 4            # pos+bias (fp32, once per tile)
                      + B * N * E * out_itemsize)

    out = pl.pallas_call(
        _embed_kernel,
        out_shape=jax.ShapeDtypeStruct((B, N, E), out_dtype),
        grid_spec=pltpu.PrefetchScalarGridSpec(
            num_scalar_prefetch=0,
            grid=grid,
            in_specs=[
                pl.BlockSpec((1, TN, K), lambda n, b: (b, n, 0)),
                pl.BlockSpec((K, E), lambda n, b: (0, 0)),
                pl.BlockSpec((TN, E), lambda n, b: (n, 0)),
            ],
            out_specs=pl.BlockSpec((1, TN, E), lambda n, b: (b, n, 0)),
        ),
        compiler_params=pltpu.CompilerParams(
            dimension_semantics=("parallel", "parallel"),
            allow_input_fusion=[True, False, False],
            vmem_limit_bytes=48 * 1024 * 1024,
        ),
        cost_estimate=pl.CostEstimate(
            flops=2 * B * N * K * E,
            transcendentals=0,
            bytes_accessed=bytes_accessed,
        ),
    )(patches, w_flat, pos_plus_bias)
    return out


if __name__ == "__main__":
    # Small config consistent with the module:
    #   num_channels=4, image_size=16, patch_size=4 -> num_patches=16, hidden_size=32
    B, C, IMG, P, E = 2, 4, 16, 4, 32
    N = (IMG // P) ** 2
    K = C * P * P

    key = jax.random.PRNGKey(0)
    k1, k2, k3, k4 = jax.random.split(key, 4)

    pixel_values = jax.random.normal(k1, (B, C, IMG, IMG), dtype=jnp.float32)
    conv_weight = jax.random.normal(k2, (E, C, P, P), dtype=jnp.float32) * 0.02
    conv_bias = jax.random.normal(k3, (E,), dtype=jnp.float32) * 0.02
    pos_embedding = jax.random.normal(k4, (N, E), dtype=jnp.float32) * 0.02

    out = siglip_vision_embeddings(pixel_values, conv_weight, conv_bias,
                                   pos_embedding, patch_size=P)
    out = jax.block_until_ready(out)

    # Reference in plain JAX (fp32 conv, matches PyTorch NCHW semantics).
    ref_conv = jax.lax.conv_general_dilated(
        pixel_values, conv_weight, window_strides=(P, P), padding="VALID",
        dimension_numbers=("NCHW", "OIHW", "NCHW"))            # [B, E, Hp, Wp]
    ref = jnp.transpose(ref_conv.reshape(B, E, N), (0, 2, 1))  # [B, N, E]
    ref = ref + conv_bias[None, None, :] + pos_embedding[None, :, :]

    assert out.shape == (B, N, E), out.shape
    # Kernel uses bf16 matmul operands with fp32 accumulation, reference is
    # full fp32 -> compare with a bf16-appropriate tolerance.
    assert jnp.allclose(out, ref, atol=2e-2, rtol=2e-2), \
        float(jnp.max(jnp.abs(out - ref)))
    print("KERNEL_OK")
</pallas_src>

<mosaic_0001>
module attributes {stable_mosaic.version = 11 : i64} {
  func.func @_embed_kernel(%arg0: i32, %arg1: i32, %arg2: memref<1x16x64xbf16, #tpu.memory_space<vmem>>, %arg3: memref<64x32xbf16, #tpu.memory_space<vmem>>, %arg4: memref<16x32xf32, #tpu.memory_space<vmem>>, %arg5: memref<1x16x32xf32, #tpu.memory_space<vmem>>) attributes {dimension_semantics = [#tpu.dimension_semantics<parallel>, #tpu.dimension_semantics<parallel>], iteration_bounds = array<i64: 1, 2>, scalar_prefetch = 0 : i64, scratch_operands = 0 : i64, tpu.core_type = #tpu.core_type<tc>, window_params = [{transform_indices = @transform_0, window_bounds = array<i64: 1, 16, 64>}, {pipeline_mode = #tpu.pipeline_mode<synchronous>, transform_indices = @transform_1, window_bounds = array<i64: 64, 32>}, {transform_indices = @transform_2, window_bounds = array<i64: 16, 32>}, {transform_indices = @transform_3, window_bounds = array<i64: 1, 16, 32>}]} {
    %c0 = arith.constant 0 : index
    %c0_0 = arith.constant 0 : index
    %c0_1 = arith.constant 0 : index
    %0 = vector.load %arg2[%c0, %c0_0, %c0_1] : memref<1x16x64xbf16, #tpu.memory_space<vmem>>, vector<1x16x64xbf16>
    %1 = vector.shape_cast %0 : vector<1x16x64xbf16> to vector<16x64xbf16>
    %c0_2 = arith.constant 0 : index
    %c0_3 = arith.constant 0 : index
    %2 = vector.load %arg3[%c0_2, %c0_3] : memref<64x32xbf16, #tpu.memory_space<vmem>>, vector<64x32xbf16>
    %cst = arith.constant dense<0.000000e+00> : vector<16x32xf32>
    %3 = tpu.matmul %1, %2, %cst {dimension_numbers = #tpu.dot_dimension_numbers<[1], [0], [0], [1], [0, 0, 1, 1], [], []>} : vector<16x64xbf16>, vector<64x32xbf16>, vector<16x32xf32> -> vector<16x32xf32>
    %c0_4 = arith.constant 0 : index
    %c0_5 = arith.constant 0 : index
    %4 = vector.load %arg4[%c0_4, %c0_5] : memref<16x32xf32, #tpu.memory_space<vmem>>, vector<16x32xf32>
    %5 = arith.addf %3, %4 : vector<16x32xf32>
    %c0_6 = arith.constant 0 : index
    %c0_7 = arith.constant 0 : index
    %c0_8 = arith.constant 0 : index
    %6 = vector.load %arg5[%c0_6, %c0_7, %c0_8] : memref<1x16x32xf32, #tpu.memory_space<vmem>>, vector<1x16x32xf32>
    %7 = vector.shape_cast %6 : vector<1x16x32xf32> to vector<16x32xf32>
    %8 = vector.shape_cast %5 : vector<16x32xf32> to vector<1x16x32xf32>
    tpu.vector_store %arg5[%c0_6, %c0_7, %c0_8], %8 {strides = array<i32>} : memref<1x16x32xf32, #tpu.memory_space<vmem>>, vector<1x16x32xf32>,
    return
  }
  func.func @transform_0(%arg0: i32, %arg1: i32) -> (i32, i32, i32) {
    %c0_i32 = arith.constant 0 : i32
    %c0_i32_0 = arith.constant 0 : i32
    return %arg1, %arg0, %c0_i32 : i32, i32, i32
  }
  func.func @transform_1(%arg0: i32, %arg1: i32) -> (i32, i32) {
    %c0_i32 = arith.constant 0 : i32
    %c0_i32_0 = arith.constant 0 : i32
    %c0_i32_1 = arith.constant 0 : i32
    return %c0_i32, %c0_i32_0 : i32, i32
  }
  func.func @transform_2(%arg0: i32, %arg1: i32) -> (i32, i32) {
    %c0_i32 = arith.constant 0 : i32
    %c0_i32_0 = arith.constant 0 : i32
    return %arg0, %c0_i32 : i32, i32
  }
  func.func @transform_3(%arg0: i32, %arg1: i32) -> (i32, i32, i32) {
    %c0_i32 = arith.constant 0 : i32
    %c0_i32_0 = arith.constant 0 : i32
    return %arg1, %arg0, %c0_i32 : i32, i32, i32
  }
}

</mosaic_0001>

<bundles_post_ra>
// kernel: tpu_custom_call.1
= control target key start
LH: loop header
LB: loop body
LE: loop exit
PB: predicated region body
PF: predicated region fallthrough
CT: control target
= control target key end

     0   :  { %8 = vsyncpa [#allocation3], 0  ;;  %s760_s0 = inlined_call_operand.vmem [shape: bf16[2,16,64], index: 0, kind: input, shape index: {}]   ;;  %s761_s1 = inlined_call_operand.vmem [shape: bf16[64,32], index: 1, kind: input, shape index: {}]   ;;  %s762_s2 = inlined_call_operand.vmem [shape: f32[16,32], index: 2, kind: input, shape index: {}]   ;;  %s763_s3 = inlined_call_operand.hbm [shape: f32[2,16,32], index: 3, kind: output, shape index: {}]  }
   0x1   :  { %10 = vsyncpa [#allocation3 + $0x1], 0  ;;  %s628_s12 = smov 0   ;;  %s630_s13 = smov 0  }
   0x2   :  { %s632_s14 = smov 0   ;;  %s634_s15 = smov 0  }
   0x3   :  { %s636_s16 = smov 0   ;;  %s638_s17 = smov 0  }
   0x4 LB: > { %s422_s18 = sadd.s32 4294967295, %s601_s17   ;;  %s423_s19 = sadd.s32 4294967294, %s601_s17   ;;  %s601_s17 = sphi %s638_s17, %s16_s17   ;;  %s597_s16 = sphi %s636_s16, %s770_s16   ;;  %s593_s15 = sphi %s634_s15, %s769_s15   ;;  %s589_s14 = sphi %s632_s14, %s768_s14   ;;  %s585_s13 = sphi %s630_s13, %s767_s13   ;;  %s581_s12 = sphi %s628_s12, %s766_s12  }
   0x5   : > { %s25_s20 = sadd.s32 1, %s597_s16  ;;  %s112_s21 = sadd.s32 1, %s589_s14 }
   0x6   : > { %p26_p0 = scmp.ge.s32.totalorder %s25_s20, 2  ;;  %p122_p1 = scmp.ne.s32.totalorder %s589_s14, %s585_s13 }
   0x7   : > { %p123_p2 = scmp.eq.s32.totalorder %s422_s18, 1  ;;  %p128_p3 = scmp.ne.s32.totalorder %s585_s13, %s581_s12 }
   0x8   : > { %s772_s20 = smov (%p26_p0, %s25_s20), 0  ;;  %p129_p5 = scmp.eq.s32.totalorder %s423_s19, 1 }
   0x9   : > { %p668_p4 = por %p123_p2, %p122_p1  ;;  %s107_s23 = ssub.s32 %s597_s16, %s772_s20 }
   0xa   : > { %p427_p6 = scmp.ge.s32.totalorder %s601_s17, 1  ;;  %p110_p7 = scmp.eq.s32.totalorder %s107_s23, 0 }
   0xb   : > { %p675_p8 = por %p129_p5, %p128_p3  ;;  %p172_p9 = scmp.lt.s32.totalorder %s601_s17, 3 }
   0xc   : > { %s681_s25 = scalar_select %p110_p7, %s589_s14, %s112_s21  }
   0xd   : > { %p173_p10 = pnand %p427_p6, %p172_p9 }
   0xe   : > { %p206_p11 = scmp.lt.s32.totalorder (!%p173_p10), %s593_s15, 1  ;;  %s202_s18 = sand.u32 (!%p173_p10), 1, %s585_s13  }
   0xf   : > { %176 = sbr.rel (%p173_p10) target bundleno = 250 (0xfa), region = 32  ;;  %s428_s19 = sshll.u32 (!%p173_p10), %s202_s18, 4 }
  0x10   : > { %s204_s26 = scalar_lea.vmem (!%p173_p10), [#allocation2], %s428_s19  ;;  %s443_s28 = sshll.u32 (!%p173_p10), %s593_s15, 8 }
  0x11   : > { %s328_s27 = sshll.u32 (!%p173_p10), %s204_s26, 4  ;;  %s605_s8 = smov (!%p173_p10), [#allocation2]   ;;  %s708_s27 = int_to_ptr.vmem [resolvable:$true] %s328_s27 }
  0x12   : > { %s525_s7 = scalar_lea.vmem (!%p173_p10), %s708_s27, 256 }
  0x13   : > { %p526_p12 = scmp.ne.s32.totalorder (!%p173_p10), %s708_s27, %s525_s7 }
  0x14   : > { %v520_v0 = vld [vmem:[%s761_s1 + $0x18] sm:$0xff]   ;;  %v603_v1 = vmov 0.0   ;;  %v521_v2 = vld [vmem:[%s761_s1 + $0x10] sm:$0xff]   ;;  %vm604_vm0 = vmmov 0   ;;  %s207_s30 = scalar_select %p206_p11, %s593_s15, 1  ;;  %v522_v3 = vld [vmem:[%s761_s1 + $0x8] sm:$0xff]  }
  0x15   : > { %449 = vmatprep.subr.bf16.mxu0 %v603_v1  ;;  %457 = vmatprep.mubr.msk.bf16.mxu0 %vm604_vm0, %v603_v1  ;;  %v523_v4 = vld [vmem:[%s761_s1] sm:$0xff]   ;;  %vm264_vm1 = vcmask 523264   ;;  %vm309_vm2 = vcmask 261120   ;;  %v234_v10 = vld [vmem:[%s762_s2 + $0x8] sm:$0xff]  ;;  %s715_s15 = scalar_lea.sflag [#allocation3], %s202_s18  ;;  %p527_p13 = pnand %p526_p12, %p668_p4 }
  0x16   : > { %450 = vmatpush3.bf16.msra.mxu0 %v520_v0  ;;  %s442_s6 = sshll.u32 %s207_s30, 3  ;;  %v233_v6 = vld [vmem:[%s762_s2] sm:$0xff] }
  0x17   : > { %451 = vmatprep.subr.bf16.mxu0 %v603_v1  ;;  %s213_s9 = scalar_lea.vmem %s760_s0, %s442_s6  ;;  %s713_s6 = scalar_lea.hbm %s763_s3, %s443_s28 }
  0x18   : > { %v524_v5 = vld [vmem:[%s213_s9] sm:$0xff]   ;;  %p528_p0 = pneg %p527_p13  ;;  %s529_s9 = sshll.u32 %s605_s8, 4  ;;  %s530_s9 = int_to_ptr.vmem [resolvable:$false] %s529_s9 }
  0x19   : > { %s531_s10 = scalar_lea.vmem %s530_s9, 512  ;;  %p532_p1 = scmp.lt.s32.totalorder %s708_s27, %s530_s9 }
  0x1a   : > { %452 = vmatpush3.bf16.msra.mxu0 %v521_v2  ;;  %p533_p2 = scmp.lt.s32.totalorder %s531_s10, %s525_s7 }
  0x1b   : > { %453 = vmatprep.subr.bf16.mxu0 %v603_v1 }
  0x1c   : > { %p534_p3 = por %p533_p2, %p532_p1 }
  0x1e   : > { %454 = vmatpush3.bf16.msra.mxu0 %v522_v3  ;;  %p535_p5 = pnand %p534_p3, %p528_p0 }
  0x1f   : > { %455 = vmatprep.subr.bf16.mxu0 %v603_v1 }
  0x22   : > { %456 = vmatpush3.bf16.msra.mxu0 %v523_v4 }
  0x25   : > { %458 = vmatmul.mubr.msk.bf16.vlgmr.msra.gmra.mxu0 %vm264_vm1, %v524_v5 }
  0xe5   : > { %v302_v7 = vpop.f32.mrf.mxu0 }
  0xe6   : > { %v303_v8 = vadd.f32 %v302_v7, %v233_v6 }
  0xe7   : > { %v459_v9 = vpop.f32.mrf.mxu0 }
  0xe8   : > { %310 = vst.msk [vmem:[%s204_s26] sm:$0xff] %vm309_vm2, %v303_v8 }
  0xe9   : > { %v305_v11 = vpop.f32.mrf.mxu0 }
  0xea   : > { %v306_v12 = vadd.f32 %v305_v11, %v234_v10 }
  0xeb   : > { %v460_v13 = vpop.f32.mrf.mxu0 }
  0xec   : > { %311 = vst.msk [vmem:[%s204_s26 + $0x8] sm:$0xff] %vm309_vm2, %v306_v12 }
  0xed   : > { %538 = shalt.err (!%p535_p5)
}
  0xee   : > { %s539_s11 = scalar_lea.hbm %s713_s6, 256  ;;  %s543_s21 = scalar_lea.hbm %s763_s3, 512 }
  0xef   : > { %p540_p6 = scmp.ne.s32.totalorder %s713_s6, %s539_s11  ;;  %p544_p10 = scmp.lt.s32.totalorder %s713_s6, %s763_s3 }
  0xf0   : > { %p545_p11 = scmp.lt.s32.totalorder %s543_s21, %s539_s11 }
  0xf1   : > { %p541_p7 = pnand %p540_p6, %p668_p4 }
  0xf2   : > { %p546_p12 = por %p545_p11, %p544_p10 }
  0xf3   : > { %p542_p9 = pneg %p541_p7 }
  0xf5   : > { %p547_p13 = pnand %p546_p12, %p542_p9 }
  0xf7   : > { %550 = shalt.err (!%p547_p13)
}
  0xf8   : > { %s606_s28 = smov 128   ;;  %s607_s29 = smov 8  }
  0xf9   : > { %461 = dma.vmem_to_hbm [thread:$0]  (%p668_p4), %s708_s27, 256, %s713_s6, %s715_s15, %s606_s28, %s606_s28, %s607_s29  }
  0xfa PF: > { %p467_p0 = scmp.ge.s32.totalorder %s601_s17, 2  ;;  %s343_s30 = sand.u32 1, %s581_s12  }
  0xfb   : > { %s344_s4 = scalar_lea.sflag [#allocation3], %s343_s30 }
  0xfc   : > { %p464_p1 = pnand %p467_p0, %p675_p8 }
  0xfe   : > { %p465_p2 = pneg %p464_p1 }
 0x100   : > { %576 = dma.done.wait (%p465_p2), %s344_s4, 256  }
 0x101   : > { %578 = vsyncadd (%p465_p2), %s344_s4, 4294967040  ;;  %s16_s17 = sadd.s32 1, %s601_s17   ;;  %s766_s12 = smov %s585_s13 }
 0x102   : > { %p13_p3 = scmp.ge.s32.totalorder %s16_s17, 4   ;;  %s767_s13 = smov %s589_s14 }
 0x103   : > { %s768_s14 = smov %s681_s25  ;;  %s769_s15 = smov %s597_s16 }
 0x104   : > { %s770_s16 = smov %s772_s20  ;;  %15 = sbr.rel (!%p13_p3) target bundleno = 4 (0x4), region = 70 }
 0x109   :  { %349 = vsyncpa [#allocation3], 1 }
 0x10a   :  { %351 = vsyncpa [#allocation3 + $0x1], 1 }

</bundles_post_ra>
